<compile_context>
chip_gen: v7x
topology: tpu7x:2x2x1
jax: 0.10.0
libtpu: 0.0.40
codegen_flags: <defaults>
</compile_context>

<pallas_src>
import functools

import jax
import jax.numpy as jnp
from jax.experimental import pallas as pl
from jax.experimental.pallas import tpu as pltpu


_VMEM_BUDGET = 48 << 20        # total footprint target; safe on v5e/v6e/v7x
_VMEM_LIMIT_CAP = 56 << 20     # never ask for more than this (v7x has 64 MiB/TC)
_TARGET_TILE_BYTES = 1 << 20   # ~1 MiB of x per grid step amortizes step overhead


def _round_up(x: int, m: int) -> int:
    return ((x + m - 1) // m) * m


def _projection_kernel(x_ref, w_ref, b_ref, o_ref):
    # x_ref: (tm, E), w_ref: (E, tn), b_ref: (1, tn) f32, o_ref: (tm, tn)
    acc = jnp.dot(x_ref[...], w_ref[...], preferred_element_type=jnp.float32)
    o_ref[...] = (acc + b_ref[...]).astype(o_ref.dtype)


def _choose_tiles(M: int, E: int, N: int, itemsize: int):
    """Pick (tm, tn) from the shape and a generation-safe VMEM budget."""
    row_align = max(8, 32 // itemsize)  # 8 for f32, 16 for bf16

    # N tile: stream weight columns only if the (double-buffered) resident
    # weight would eat more than ~25% of the VMEM budget.
    if N <= 128 or 2 * E * N * itemsize <= _VMEM_BUDGET // 4:
        tn = N
    else:
        tn = max(128, ((_VMEM_BUDGET // 4) // (2 * E * itemsize)) // 128 * 128)
        if tn >= N:
            tn = N

    # M tile: target ~1 MiB of x per step, capped so that
    # 2*(x tile + out tile) + 2*weight tile + bias fits the budget.
    weight_bytes = 2 * E * tn * itemsize + 2 * tn * 4  # 2-buffered weight + f32 bias
    avail = max(_VMEM_BUDGET - weight_bytes, 2 * row_align * (E + tn) * itemsize)
    tm_max = max(row_align,
                 (avail // (2 * (E + tn) * itemsize)) // row_align * row_align)
    tm_target = _round_up(max(1, _TARGET_TILE_BYTES // max(1, E * itemsize)),
                          row_align)
    tm = min(tm_target, tm_max)

    # v7x megacore: keep >= 2 balanced row tiles when the work is big enough
    # for the extra grid step to be worth it.
    if M * E * itemsize >= 2 * _TARGET_TILE_BYTES:
        tm = min(tm, _round_up(-(-M // 2), row_align))

    if tm >= M:
        tm = M  # single full-extent row block (full-dim blocks are always legal)
    return tm, tn


@functools.partial(jax.jit, static_argnames=("force_pallas",))
def classification_postprocess(x, weight_t, bias_f32, *, force_pallas=False):
    """Forward pass of ClassificationPostprocessor.

    x:        (B, O, E) activations.
    weight_t: (E, out_dim)  pre-transposed nn.Linear weight (same dtype as x).
    bias_f32: (1, out_dim)  bias pre-cast to float32.
    Returns (B, out_dim) if O == 1 else (B, O, out_dim)  [torch .squeeze(dim=1)].
    """
    if x.dtype != weight_t.dtype:
        raise ValueError(
            f"x dtype {x.dtype} must match weight dtype {weight_t.dtype}; "
            "a mismatch silently upcasts the resident weight in VMEM.")

    B, O, E = x.shape
    N = weight_t.shape[1]
    M = B * O
    itemsize = jnp.dtype(x.dtype).itemsize

    tm, tn = _choose_tiles(M, E, N, itemsize)
    grid_m = pl.cdiv(M, tm)
    grid_n = pl.cdiv(N, tn)

    x2d = x.reshape(M, E)

    if grid_m * grid_n == 1 and not force_pallas:
        # Whole problem fits one tile: custom-call + per-step overhead exceeds
        # the work, so let XLA's fused GEMM handle it.
        y2d = (jnp.dot(x2d, weight_t, preferred_element_type=jnp.float32)
               + bias_f32).astype(x.dtype)
    else:
        footprint = (2 * tm * (E + tn) * itemsize   # double-buffered x + out tiles
                     + 2 * E * tn * itemsize        # resident weight (assume 2 bufs)
                     + 2 * tn * 4)                  # bias (f32)
        vmem_limit = min(_VMEM_LIMIT_CAP,
                         _round_up(footprint, 1 << 20) + (4 << 20))

        cost = pl.CostEstimate(
            flops=2 * M * E * N,
            transcendentals=0,
            bytes_accessed=(M * E + E * N + M * N) * itemsize + N * 4,
        )

        y2d = pl.pallas_call(
            _projection_kernel,
            out_shape=jax.ShapeDtypeStruct((M, N), x.dtype),
            grid_spec=pl.GridSpec(
                grid=(grid_m, grid_n),
                in_specs=[
                    pl.BlockSpec((tm, E), lambda i, j: (i, 0)),   # streamed rows
                    pl.BlockSpec((E, tn), lambda i, j: (0, j)),   # weight columns
                    pl.BlockSpec((1, tn), lambda i, j: (0, j)),   # bias
                ],
                out_specs=pl.BlockSpec((tm, tn), lambda i, j: (i, j)),
            ),
            compiler_params=pltpu.CompilerParams(
                dimension_semantics=("parallel", "parallel"),
                vmem_limit_bytes=vmem_limit,
            ),
            cost_estimate=cost,
        )(x2d, weight_t, bias_f32)

    y = y2d.reshape(B, O, N)
    if O == 1:  # torch .squeeze(dim=1) only squeezes a size-1 dim
        y = y.reshape(B, N)
    return y


def prepare_classifier_params(weight, bias):
    """One-time parameter prep outside the hot path.

    weight: (out_dim, E) in nn.Linear layout; bias: (out_dim,).
    Returns weight_t: (E, out_dim) and bias_f32: (1, out_dim) float32.
    """
    return jnp.asarray(weight).T, jnp.asarray(bias, jnp.float32).reshape(1, -1)


def init_linear_params(key, in_features, out_features, dtype=jnp.float32):
    # Deterministic init matching nn.Linear's U(-1/sqrt(in), 1/sqrt(in)) scheme.
    kw, kb = jax.random.split(key)
    bound = 1.0 / (in_features ** 0.5)
    weight = jax.random.uniform(kw, (out_features, in_features), dtype,
                                minval=-bound, maxval=bound)
    bias = jax.random.uniform(kb, (out_features,), dtype,
                              minval=-bound, maxval=bound)
    return weight, bias


if __name__ == "__main__":
    key = jax.random.PRNGKey(0)
    kx1, kx2, kx3, kp1, kp2 = jax.random.split(key, 5)

    # Case 1: sequence classifier, in_shape=[O=8, E=32], out_dim=16.
    # Force the Pallas path so the kernel itself is exercised at this size.
    B, O, E, out_dim = 2, 8, 32, 16
    w1, b1 = init_linear_params(kp1, E, out_dim)
    wt1, bf1 = prepare_classifier_params(w1, b1)
    wt1, bf1 = jax.block_until_ready((wt1, bf1))
    x1 = jax.random.normal(kx1, (B, O, E), jnp.float32)
    y1 = jax.block_until_ready(
        classification_postprocess(x1, wt1, bf1, force_pallas=True))
    assert y1.shape == (B, O, out_dim), y1.shape
    ref1 = x1 @ w1.T + b1
    assert jnp.allclose(y1, ref1, atol=1e-4), "mismatch (O>1 case)"

    # Case 2: plain classifier, in_shape=[O=1, E=32] -> squeezes dim 1.
    # Auto path (single tile -> fused XLA GEMM short-circuit).
    x2 = jax.random.normal(kx2, (B, 1, E), jnp.float32)
    y2 = jax.block_until_ready(classification_postprocess(x2, wt1, bf1))
    assert y2.shape == (B, out_dim), y2.shape
    ref2 = (x2 @ w1.T + b1).reshape(B, out_dim)
    assert jnp.allclose(y2, ref2, atol=1e-4), "mismatch (O==1 case)"

    # Case 3: medium shape that exercises the multi-tile, ragged-last-tile,
    # masked-narrow-output Pallas path (M=2046 rows -> 2 row tiles).
    B3, O3, E3, out3 = 2, 1023, 256, 10
    w3, b3 = init_linear_params(kp2, E3, out3)
    wt3, bf3 = prepare_classifier_params(w3, b3)
    x3 = jax.random.normal(kx3, (B3, O3, E3), jnp.float32)
    y3 = jax.block_until_ready(classification_postprocess(x3, wt3, bf3))
    assert y3.shape == (B3, O3, out3), y3.shape
    ref3 = x3 @ w3.T + b3
    assert jnp.allclose(y3, ref3, atol=1e-2, rtol=1e-2), "mismatch (medium case)"

    print("KERNEL_OK")
</pallas_src>

<mosaic_0001>
module attributes {stable_mosaic.version = 11 : i64} {
  func.func @_projection_kernel(%arg0: i32, %arg1: i32, %arg2: memref<16x32xf32, #tpu.memory_space<vmem>>, %arg3: memref<32x16xf32, #tpu.memory_space<vmem>>, %arg4: memref<1x16xf32, #tpu.memory_space<vmem>>, %arg5: memref<16x16xf32, #tpu.memory_space<vmem>>) attributes {dimension_semantics = [#tpu.dimension_semantics<parallel>, #tpu.dimension_semantics<parallel>], iteration_bounds = array<i64: 1, 1>, scalar_prefetch = 0 : i64, scratch_operands = 0 : i64, tpu.core_type = #tpu.core_type<tc>, window_params = [{transform_indices = @transform_0, window_bounds = array<i64: 16, 32>}, {transform_indices = @transform_1, window_bounds = array<i64: 32, 16>}, {transform_indices = @transform_2, window_bounds = array<i64: 1, 16>}, {transform_indices = @transform_3, window_bounds = array<i64: 16, 16>}]} {
    %c0 = arith.constant 0 : index
    %c0_0 = arith.constant 0 : index
    %0 = vector.load %arg2[%c0, %c0_0] : memref<16x32xf32, #tpu.memory_space<vmem>>, vector<16x32xf32>
    %c0_1 = arith.constant 0 : index
    %c0_2 = arith.constant 0 : index
    %1 = vector.load %arg3[%c0_1, %c0_2] : memref<32x16xf32, #tpu.memory_space<vmem>>, vector<32x16xf32>
    %cst = arith.constant dense<0.000000e+00> : vector<16x16xf32>
    %2 = tpu.matmul %0, %1, %cst {dimension_numbers = #tpu.dot_dimension_numbers<[1], [0], [0], [1], [0, 0, 1, 1], [], []>} : vector<16x32xf32>, vector<32x16xf32>, vector<16x16xf32> -> vector<16x16xf32>
    %c0_3 = arith.constant 0 : index
    %c0_4 = arith.constant 0 : index
    %3 = vector.load %arg4[%c0_3, %c0_4] : memref<1x16xf32, #tpu.memory_space<vmem>>, vector<1x16xf32>
    %4 = vector.broadcast %3 : vector<1x16xf32> to vector<16x16xf32>
    %5 = arith.addf %2, %4 : vector<16x16xf32>
    %c0_5 = arith.constant 0 : index
    %c0_6 = arith.constant 0 : index
    %6 = vector.load %arg5[%c0_5, %c0_6] : memref<16x16xf32, #tpu.memory_space<vmem>>, vector<16x16xf32>
    tpu.vector_store %arg5[%c0_5, %c0_6], %5 {strides = array<i32>} : memref<16x16xf32, #tpu.memory_space<vmem>>, vector<16x16xf32>,
    return
  }
  func.func @transform_0(%arg0: i32, %arg1: i32) -> (i32, i32) {
    %c0_i32 = arith.constant 0 : i32
    %c0_i32_0 = arith.constant 0 : i32
    return %arg0, %c0_i32 : i32, i32
  }
  func.func @transform_1(%arg0: i32, %arg1: i32) -> (i32, i32) {
    %c0_i32 = arith.constant 0 : i32
    %c0_i32_0 = arith.constant 0 : i32
    return %c0_i32, %arg1 : i32, i32
  }
  func.func @transform_2(%arg0: i32, %arg1: i32) -> (i32, i32) {
    %c0_i32 = arith.constant 0 : i32
    %c0_i32_0 = arith.constant 0 : i32
    return %c0_i32, %arg1 : i32, i32
  }
  func.func @transform_3(%arg0: i32, %arg1: i32) -> (i32, i32) {
    %c0_i32 = arith.constant 0 : i32
    return %arg0, %arg1 : i32, i32
  }
}

</mosaic_0001>

<bundles_post_ra>
// kernel: classification_postprocess.1
= control target key start
LH: loop header
LB: loop body
LE: loop exit
PB: predicated region body
PF: predicated region fallthrough
CT: control target
= control target key end

     0   :  { %vm28_vm0 = vcmask 261120   ;;  %s240_s0 = inlined_call_operand.vmem [shape: f32[16,32], index: 0, kind: input, shape index: {}]   ;;  %s241_s1 = inlined_call_operand.vmem [shape: f32[32,16], index: 1, kind: input, shape index: {}]   ;;  %s242_s2 = inlined_call_operand.vmem [shape: f32[1,16], index: 2, kind: input, shape index: {}]   ;;  %s243_s3 = inlined_call_operand.hbm [shape: f32[16,16], index: 3, kind: output, shape index: {}]  }
   0x1   :  { %v17_v0 = vld [vmem:[%s241_s1] sm:$0xff]  ;;  %v18_v1 = vld [vmem:[%s241_s1 + $0x8] sm:$0xff]  ;;  %v19_v2 = vld [vmem:[%s241_s1 + $0x10] sm:$0xff] }
   0x2   :  { %v149_v3 = vpack.c.bf16 %v18_v1, %v17_v0  ;;  %v20_v4 = vld [vmem:[%s241_s1 + $0x18] sm:$0xff]  ;;  %v15_v5 = vld [vmem:[%s240_s0] sm:$0xff] }
   0x3   :  { %v153_v6 = vpack.c.bf16 %v20_v4, %v19_v2  ;;  %146 = vmatprep.mubr.msk.f32.mxu0 %vm28_vm0, %v15_v5 }
   0x4   :  { %8 = vsyncpa [#allocation3], 0  ;;  %150 = vmatprep.subr.bf16.mxu0 %v149_v3  ;;  %v16_v7 = vld [vmem:[%s240_s0 + $0x8] sm:$0xff]  ;;  %v129_v8 = vld [vmem:[%s242_s2] ss:$0 sm:$0xff]  ;;  %s184_s1 = smov [#allocation2]  }
   0x5   :  { %152 = vmatpush3.bf16.msra.mxu0 %v149_v3  ;;  %s118_s26 = sshll.u32 %s184_s1, 4  ;;  %vm110_vm1 = vcmask 130048   ;;  %s119_s26 = int_to_ptr.vmem [resolvable:$true] %s118_s26 }
   0x6   :  { %154 = vmatprep.subr.bf16.mxu0 %v153_v6  ;;  %s160_s27 = scalar_lea.vmem %s119_s26, 256  ;;  %p165_p1 = scmp.lt.s32.totalorder %s119_s26, %s119_s26 }
   0x7   :  { %p161_p0 = scmp.ne.s32.totalorder %s119_s26, %s160_s27  ;;  %p166_p2 = scmp.lt.s32.totalorder %s160_s27, %s160_s27 }
   0x9   :  { %156 = vmatpush3.bf16.msra.mxu0 %v153_v6  ;;  %p167_p3 = por %p166_p2, %p165_p1 }
   0xb   :  { %p168_p4 = pnand %p167_p3, %p161_p0 }
   0xc   :  { %147 = vmatmul.mubr.msk.f32.vlgmr.msra.gmra.mrb[0].mxu0 %vm28_vm0, %v16_v7 }
  0xdf   :  { %v148_v9 = vpop.f32.mrb[0].mxu0 }
  0xe0   :  { %v107_v10 = vadd.f32 %v148_v9, %v129_v8  ;;  %v101_v11 = vpop.f32.mrb[1].mxu0 }
  0xe1   :  { %v102_v12 = vadd.f32 %v129_v8, %v101_v11 }
  0xe2   :  { %112 = vst.msk [vmem:[#allocation2 + $0x8] sm:$0xff] %vm110_vm1, %v107_v10 }
  0xe3   :  { %111 = vst.msk [vmem:[#allocation2] sm:$0xff] %vm110_vm1, %v102_v12 }
  0xe4   :  { %171 = shalt.err (!%p168_p4)
}
  0xe5   :  { %s172_s2 = scalar_lea.hbm %s243_s3, 256 }
  0xe6   :  { %p173_p5 = scmp.ne.s32.totalorder %s243_s3, %s172_s2  ;;  %p176_p6 = scmp.lt.u32.totalorder %s172_s2, %s243_s3 }
  0xe8   :  { %p178_p7 = pnand %p176_p6, %p173_p5 }
  0xea   :  { %181 = shalt.err (!%p178_p7)
}
  0xeb   :  { %s185_s6 = smov 128   ;;  %s186_s7 = smov 8  }
  0xec   :  { %124 = dma.vmem_to_hbm [thread:$0]  %s119_s26, 256, %s243_s3, [#allocation3], %s185_s6, %s185_s6, %s186_s7  }
  0xed   :  { %182 = dma.done.wait [#allocation3], 256  }
  0xee   :  { %183 = vsyncadd [#allocation3], 4294967040 }
  0xef   :  { %128 = vsyncpa [#allocation3], 1 }

</bundles_post_ra>
